<compile_context>
chip_gen: v6e
topology: v6e:2x2x1
jax: 0.10.0
libtpu: 0.0.40
codegen_flags: <defaults>
</compile_context>

<pallas_src>
import math

import jax
import jax.numpy as jnp
from jax.experimental import pallas as pl
from jax.experimental.pallas import tpu as pltpu


def _ceil_to(a, b):
    return -(-a // b) * b


# ----------------------------------------------------------------------------
# ROIAlign (maskrcnn-benchmark semantics, aligned=False) in plain JAX.
# Returns pooled features in (R, ph, pw, C) layout (channel-last).
# ----------------------------------------------------------------------------
def roi_align_nhwc(features, rois, output_size, spatial_scale, sampling_ratio,
                   *, gather_dtype=jnp.bfloat16, out_dtype=jnp.float32):
    """features: (N, C, H, W) f32. rois: (R, 5) = [batch_idx, x1, y1, x2, y2]."""
    N, C, H, W = features.shape
    ph, pw = output_size
    R = rois.shape[0]
    assert sampling_ratio > 0, "adaptive sampling_ratio<=0 unsupported"

    batch_idx = rois[:, 0].astype(jnp.int32)
    x1 = rois[:, 1] * spatial_scale
    y1 = rois[:, 2] * spatial_scale
    x2 = rois[:, 3] * spatial_scale
    y2 = rois[:, 4] * spatial_scale

    roi_w = jnp.maximum(x2 - x1, 1.0)
    roi_h = jnp.maximum(y2 - y1, 1.0)
    bin_w = roi_w / pw
    bin_h = roi_h / ph

    gh = sampling_ratio
    gw = sampling_ratio

    py = jnp.arange(ph, dtype=jnp.float32)
    px = jnp.arange(pw, dtype=jnp.float32)
    iy = (jnp.arange(gh, dtype=jnp.float32) + 0.5) / gh
    ix = (jnp.arange(gw, dtype=jnp.float32) + 0.5) / gw

    # sample y coords: (R, ph, gh), sample x coords: (R, pw, gw)
    ys = y1[:, None, None] + (py[None, :, None] + iy[None, None, :]) * bin_h[:, None, None]
    xs = x1[:, None, None] + (px[None, :, None] + ix[None, None, :]) * bin_w[:, None, None]

    # full sampling grid: (R, ph, gh, pw, gw)
    y = jnp.broadcast_to(ys[:, :, :, None, None], (R, ph, gh, pw, gw))
    x = jnp.broadcast_to(xs[:, None, None, :, :], (R, ph, gh, pw, gw))

    valid = (y >= -1.0) & (y <= H) & (x >= -1.0) & (x <= W)

    y = jnp.maximum(y, 0.0)
    x = jnp.maximum(x, 0.0)
    y_low = jnp.minimum(jnp.floor(y).astype(jnp.int32), H - 1)
    x_low = jnp.minimum(jnp.floor(x).astype(jnp.int32), W - 1)
    y_high = jnp.minimum(y_low + 1, H - 1)
    x_high = jnp.minimum(x_low + 1, W - 1)
    y = jnp.where(y_low >= H - 1, y_low.astype(jnp.float32), y)
    x = jnp.where(x_low >= W - 1, x_low.astype(jnp.float32), x)

    ly = y - y_low.astype(jnp.float32)
    lx = x - x_low.astype(jnp.float32)
    hy = 1.0 - ly
    hx = 1.0 - lx

    # Fold valid mask and the 1/(gh*gw) mean into the bilinear weights.
    scale = valid.astype(jnp.float32) * (1.0 / (gh * gw))
    w1 = hy * hx * scale
    w2 = hy * lx * scale
    w3 = ly * hx * scale
    w4 = ly * lx * scale

    # Flat gather table of ONLY the sample points (channel-last, bf16).
    feat_flat = jnp.transpose(features, (0, 2, 3, 1)).reshape(N * H * W, C)
    feat_flat = feat_flat.astype(gather_dtype)
    base = batch_idx[:, None, None, None, None] * (H * W)

    def corner(yi, xi, w):
        idx = (base + yi * W + xi).reshape(-1)
        v = jnp.take(feat_flat, idx, axis=0).reshape(R, ph, gh, pw, gw, C)
        return w[..., None] * v.astype(jnp.float32)

    # Incremental accumulation: never keep four corner tensors alive at once.
    val = corner(y_low, x_low, w1)
    val = val + corner(y_low, x_high, w2)
    val = val + corner(y_high, x_low, w3)
    val = val + corner(y_high, x_high, w4)

    pooled = val.sum(axis=(2, 4))                              # (R, ph, pw, C)
    return pooled.astype(out_dtype)


# ----------------------------------------------------------------------------
# Pallas kernel: fused two-layer MLP head  relu(relu(x@W6+b6)@W7+b7)
# K (fc6 reduction) is tiled; f32 accumulator in VMEM; fc7 applied on last K step.
# ----------------------------------------------------------------------------
def _mlp_head_kernel(x_ref, w6_ref, b6_ref, w7_ref, b7_ref, o_ref, acc_ref):
    k = pl.program_id(1)

    @pl.when(k == 0)
    def _():
        acc_ref[...] = jnp.zeros_like(acc_ref)

    acc_ref[...] += jnp.dot(x_ref[...], w6_ref[...],
                            preferred_element_type=jnp.float32)

    @pl.when(k == pl.num_programs(1) - 1)
    def _():
        h = jnp.maximum(acc_ref[...] + b6_ref[...], 0.0)        # fc6 bias + ReLU (f32)
        h2 = jnp.dot(h.astype(w7_ref.dtype), w7_ref[...],
                     preferred_element_type=jnp.float32) + b7_ref[...]
        o_ref[...] = jnp.maximum(h2, 0.0).astype(o_ref.dtype)


def _pick_k_tile(k_pad, target=1792):
    """Largest multiple-of-128 divisor of k_pad that is <= target."""
    best = 128
    cand = 128
    while cand <= min(target, k_pad):
        if k_pad % cand == 0:
            best = cand
        cand += 128
    return best


def prepare_params(params, in_channels, resolution, *, compute_dtype=jnp.bfloat16):
    """One-time weight prep:
       * permute fc6 rows from NCHW-flatten order to (ph, pw, C) order so the data
         path can skip the NHWC->NCHW transpose (numerics unchanged),
       * zero-pad to (8,128)-friendly shapes,
       * cast weights to the MXU compute dtype (bf16)."""
    K = in_channels * resolution * resolution
    M = params["w6"].shape[1]
    M2 = params["w7"].shape[1]
    K_pad = _ceil_to(K, 128)
    M_pad = _ceil_to(max(M, M2), 128)

    w6 = params["w6"].reshape(in_channels, resolution, resolution, M)
    w6 = jnp.transpose(w6, (1, 2, 0, 3)).reshape(K, M)

    w6p = jnp.zeros((K_pad, M_pad), compute_dtype).at[:K, :M].set(w6.astype(compute_dtype))
    w7p = jnp.zeros((M_pad, M_pad), compute_dtype).at[:M, :M2].set(
        params["w7"].astype(compute_dtype))
    b6p = jnp.zeros((1, M_pad), jnp.float32).at[0, :M].set(params["b6"].astype(jnp.float32))
    b7p = jnp.zeros((1, M_pad), jnp.float32).at[0, :M2].set(params["b7"].astype(jnp.float32))

    return {"w6": w6p, "b6": b6p, "w7": w7p, "b7": b7p,
            "K": K, "M": M2, "K_pad": K_pad, "M_pad": M_pad,
            "compute_dtype": compute_dtype}


def mlp_head(x, prepared, *, row_tile=256, k_tile=None, out_dtype=jnp.float32):
    """x: (R, K) float. prepared: output of prepare_params. Returns (R, M) out_dtype."""
    R, K = x.shape
    assert K == prepared["K"], f"flattened feature size {K} != prepared {prepared['K']}"
    K_pad = prepared["K_pad"]
    M_pad = prepared["M_pad"]
    M = prepared["M"]
    compute_dtype = prepared["compute_dtype"]
    w6p, b6p, w7p, b7p = prepared["w6"], prepared["b6"], prepared["w7"], prepared["b7"]

    if k_tile is None:
        k_tile = _pick_k_tile(K_pad)           # e.g. 1792 for K=12544, no K padding
    assert k_tile % 128 == 0 and K_pad % k_tile == 0

    # Row tile: big enough to amortize the streamed w6 K-tiles, clamped for tiny R.
    row_tile = max(8, min(_ceil_to(row_tile, 8), _ceil_to(max(R, 1), 8)))
    R_pad = _ceil_to(max(R, 1), row_tile)

    # Only x needs per-call padding (weights are pre-padded); if x already comes in
    # compute_dtype (from the pooler) this is a cheap row pad, no cast pass.
    xp = x if x.dtype == compute_dtype else x.astype(compute_dtype)
    if (R_pad, K_pad) != (R, K):
        xp = jnp.pad(xp, ((0, R_pad - R), (0, K_pad - K)))

    grid = (R_pad // row_tile, K_pad // k_tile)
    n_row_tiles = grid[0]

    itemsize = jnp.dtype(compute_dtype).itemsize
    out_isz = jnp.dtype(out_dtype).itemsize
    flops = 2 * R_pad * K_pad * M_pad + 2 * R_pad * M_pad * M_pad
    bytes_accessed = (R_pad * K_pad * itemsize                  # x read once
                      + n_row_tiles * K_pad * M_pad * itemsize  # w6 streamed per row tile
                      + M_pad * M_pad * itemsize                # w7
                      + 2 * M_pad * 4                           # biases
                      + R_pad * M_pad * out_isz)                # output
    cost = pl.CostEstimate(flops=int(flops), transcendentals=0,
                           bytes_accessed=int(bytes_accessed))

    # Explicit scoped-VMEM budget (v5e default is only 16 MiB).
    vmem_need = (2 * row_tile * k_tile * itemsize        # x tiles (double-buffered)
                 + 2 * k_tile * M_pad * itemsize         # w6 tiles (double-buffered)
                 + 2 * M_pad * M_pad * itemsize          # w7 (worst case double)
                 + 4 * M_pad * 4                         # biases
                 + 2 * row_tile * M_pad * out_isz        # out tiles
                 + row_tile * M_pad * 4)                 # f32 accumulator
    vmem_limit = int(min(max(2 * vmem_need, 32 * 1024 * 1024), 64 * 1024 * 1024))

    def _call(single_buffer_consts):
        def const_spec(shape, imap):
            # Constant-index operands: the second pipeline buffer is wasted VMEM.
            if single_buffer_consts:
                return pl.BlockSpec(shape, imap, pipeline_mode=pl.Buffered(1))
            return pl.BlockSpec(shape, imap)

        return pl.pallas_call(
            _mlp_head_kernel,
            out_shape=jax.ShapeDtypeStruct((R_pad, M_pad), out_dtype),
            grid_spec=pltpu.PrefetchScalarGridSpec(
                num_scalar_prefetch=0,
                grid=grid,
                in_specs=[
                    pl.BlockSpec((row_tile, k_tile), lambda r, k: (r, k)),  # x
                    pl.BlockSpec((k_tile, M_pad), lambda r, k: (k, 0)),     # fc6 W K-tile
                    const_spec((1, M_pad), lambda r, k: (0, 0)),            # fc6 bias
                    const_spec((M_pad, M_pad), lambda r, k: (0, 0)),        # fc7 W (full)
                    const_spec((1, M_pad), lambda r, k: (0, 0)),            # fc7 bias
                ],
                out_specs=pl.BlockSpec((row_tile, M_pad), lambda r, k: (r, 0)),
                scratch_shapes=[pltpu.VMEM((row_tile, M_pad), jnp.float32)],
            ),
            compiler_params=pltpu.CompilerParams(
                dimension_semantics=("parallel", "arbitrary"),
                vmem_limit_bytes=vmem_limit),
            cost_estimate=cost,
        )(xp, w6p, b6p, w7p, b7p)

    try:
        out = _call(True)
    except Exception:
        # pipeline_mode / Buffered(1) unsupported by this jax: fall back to defaults.
        out = _call(False)

    return out[:R, :M]


# ----------------------------------------------------------------------------
# Full forward: FPN2MLPFeatureExtractor.forward(x, proposals)
# ----------------------------------------------------------------------------
def fpn2mlp_feature_extractor(features, rois, prepared, *, resolution,
                              spatial_scale, sampling_ratio,
                              row_tile=256, k_tile=None, out_dtype=jnp.float32):
    cd = prepared["compute_dtype"]
    pooled = roi_align_nhwc(features, rois, (resolution, resolution),
                            spatial_scale, sampling_ratio,
                            gather_dtype=cd, out_dtype=cd)      # (R, res, res, C) bf16
    R = pooled.shape[0]
    flat = pooled.reshape(R, -1)                                # channel-last flatten
    return mlp_head(flat, prepared, row_tile=row_tile, k_tile=k_tile,
                    out_dtype=out_dtype)


def _kaiming_uniform(key, fan_in, fan_out):
    # matches make_fc: nn.init.kaiming_uniform_(weight, a=1); bias zeros.
    bound = math.sqrt(3.0 / fan_in)   # sqrt(6 / ((1 + a^2) * fan_in)), a=1
    # stored as (fan_in, fan_out) so the kernel computes x @ W (== x @ W_pt.T)
    return jax.random.uniform(key, (fan_in, fan_out), jnp.float32, -bound, bound)


if __name__ == "__main__":
    # ---- synthetic config (small shapes) -----------------------------------
    in_channels = 4
    resolution = 4
    spatial_scale = 0.25
    sampling_ratio = 2
    representation_size = 32

    N, C, H, W = 2, in_channels, 16, 16
    rois_per_image = 4
    R = N * rois_per_image
    input_size = in_channels * resolution ** 2

    key = jax.random.PRNGKey(0)
    k_feat, k_box, k_w6, k_w7 = jax.random.split(key, 4)

    features = jax.random.normal(k_feat, (N, C, H, W), jnp.float32)

    # proposals in image coordinates (image size = H/scale = 64)
    img_size = H / spatial_scale
    pts = jax.random.uniform(k_box, (R, 4), jnp.float32, 0.0, img_size)
    x1 = jnp.minimum(pts[:, 0], pts[:, 2])
    x2 = jnp.maximum(pts[:, 0], pts[:, 2])
    y1 = jnp.minimum(pts[:, 1], pts[:, 3])
    y2 = jnp.maximum(pts[:, 1], pts[:, 3])
    batch_idx = jnp.repeat(jnp.arange(N, dtype=jnp.float32), rois_per_image)
    rois = jnp.stack([batch_idx, x1, y1, x2, y2], axis=1)       # (R, 5)

    params = {
        "w6": _kaiming_uniform(k_w6, input_size, representation_size),  # NCHW-flatten order
        "b6": jnp.zeros((representation_size,), jnp.float32),
        "w7": _kaiming_uniform(k_w7, representation_size, representation_size),
        "b7": jnp.zeros((representation_size,), jnp.float32),
    }
    prepared = prepare_params(params, in_channels, resolution)

    out = fpn2mlp_feature_extractor(
        features, rois, prepared,
        resolution=resolution, spatial_scale=spatial_scale,
        sampling_ratio=sampling_ratio)
    out = jax.block_until_ready(out)

    # ---- reference: module semantics (NCHW flatten + original w6), with the
    # same bf16 pooled features / bf16 weights + f32 accumulation as the kernel ----
    pooled = roi_align_nhwc(features, rois, (resolution, resolution),
                            spatial_scale, sampling_ratio,
                            gather_dtype=jnp.bfloat16, out_dtype=jnp.bfloat16)
    flat_nchw = jnp.transpose(pooled.astype(jnp.float32), (0, 3, 1, 2)).reshape(R, -1)

    def q(a):
        return a.astype(jnp.bfloat16).astype(jnp.float32)

    hp = jax.lax.Precision.HIGHEST
    ref = jnp.maximum(jnp.dot(q(flat_nchw), q(params["w6"]), precision=hp)
                      + params["b6"], 0.0)
    ref = jnp.maximum(jnp.dot(q(ref), q(params["w7"]), precision=hp)
                      + params["b7"], 0.0)

    assert out.shape == (R, representation_size)
    assert jnp.allclose(out, ref, atol=1e-3, rtol=1e-3)
    print("KERNEL_OK")
</pallas_src>

<mosaic_0001>
module attributes {stable_mosaic.version = 11 : i64} {
  func.func @_mlp_head_kernel(%arg0: i32, %arg1: i32, %arg2: memref<8x128xbf16, #tpu.memory_space<vmem>>, %arg3: memref<128x128xbf16, #tpu.memory_space<vmem>>, %arg4: memref<1x128xf32, #tpu.memory_space<vmem>>, %arg5: memref<128x128xbf16, #tpu.memory_space<vmem>>, %arg6: memref<1x128xf32, #tpu.memory_space<vmem>>, %arg7: memref<8x128xf32, #tpu.memory_space<vmem>>, %arg8: memref<8x128xf32, #tpu.memory_space<vmem>>) attributes {dimension_semantics = [#tpu.dimension_semantics<parallel>, #tpu.dimension_semantics<arbitrary>], iteration_bounds = array<i64: 1, 1>, scalar_prefetch = 0 : i64, scratch_operands = 1 : i64, tpu.core_type = #tpu.core_type<tc>, window_params = [{transform_indices = @transform_0, window_bounds = array<i64: 8, 128>}, {transform_indices = @transform_1, window_bounds = array<i64: 128, 128>}, {pipeline_mode = #tpu.pipeline_mode<synchronous>, transform_indices = @transform_2, window_bounds = array<i64: 1, 128>}, {pipeline_mode = #tpu.pipeline_mode<synchronous>, transform_indices = @transform_3, window_bounds = array<i64: 128, 128>}, {pipeline_mode = #tpu.pipeline_mode<synchronous>, transform_indices = @transform_4, window_bounds = array<i64: 1, 128>}, {transform_indices = @transform_5, window_bounds = array<i64: 8, 128>}]} {
    %c0_i32 = arith.constant 0 : i32
    %0 = arith.cmpi eq, %arg1, %c0_i32 : i32
    %1 = arith.extui %0 : i1 to i32
    %c0_i32_0 = arith.constant 0 : i32
    %2 = arith.cmpi ne, %1, %c0_i32_0 : i32
    scf.if %2 {
      %cst_10 = arith.constant 0.000000e+00 : f32
      %12 = vector.broadcast %cst_10 : f32 to vector<8x128xf32>
      %c0_11 = arith.constant 0 : index
      %c0_12 = arith.constant 0 : index
      %13 = vector.load %arg8[%c0_11, %c0_12] : memref<8x128xf32, #tpu.memory_space<vmem>>, vector<8x128xf32>
      tpu.vector_store %arg8[%c0_11, %c0_12], %12 {strides = array<i32>} : memref<8x128xf32, #tpu.memory_space<vmem>>, vector<8x128xf32>,
    } else {
    }
    %c0 = arith.constant 0 : index
    %c0_1 = arith.constant 0 : index
    %3 = vector.load %arg8[%c0, %c0_1] : memref<8x128xf32, #tpu.memory_space<vmem>>, vector<8x128xf32>
    %c0_2 = arith.constant 0 : index
    %c0_3 = arith.constant 0 : index
    %4 = vector.load %arg2[%c0_2, %c0_3] : memref<8x128xbf16, #tpu.memory_space<vmem>>, vector<8x128xbf16>
    %c0_4 = arith.constant 0 : index
    %c0_5 = arith.constant 0 : index
    %5 = vector.load %arg3[%c0_4, %c0_5] : memref<128x128xbf16, #tpu.memory_space<vmem>>, vector<128x128xbf16>
    %cst = arith.constant dense<0.000000e+00> : vector<8x128xf32>
    %6 = tpu.matmul %4, %5, %cst {dimension_numbers = #tpu.dot_dimension_numbers<[1], [0], [0], [1], [0, 0, 1, 1], [], []>} : vector<8x128xbf16>, vector<128x128xbf16>, vector<8x128xf32> -> vector<8x128xf32>
    %7 = arith.addf %3, %6 : vector<8x128xf32>
    %c0_6 = arith.constant 0 : index
    %c0_7 = arith.constant 0 : index
    %8 = vector.load %arg8[%c0_6, %c0_7] : memref<8x128xf32, #tpu.memory_space<vmem>>, vector<8x128xf32>
    tpu.vector_store %arg8[%c0_6, %c0_7], %7 {strides = array<i32>} : memref<8x128xf32, #tpu.memory_space<vmem>>, vector<8x128xf32>,
    %c0_i32_8 = arith.constant 0 : i32
    %9 = arith.cmpi eq, %arg1, %c0_i32_8 : i32
    %10 = arith.extui %9 : i1 to i32
    %c0_i32_9 = arith.constant 0 : i32
    %11 = arith.cmpi ne, %10, %c0_i32_9 : i32
    scf.if %11 {
      %c0_10 = arith.constant 0 : index
      %c0_11 = arith.constant 0 : index
      %12 = vector.load %arg8[%c0_10, %c0_11] : memref<8x128xf32, #tpu.memory_space<vmem>>, vector<8x128xf32>
      %c0_12 = arith.constant 0 : index
      %c0_13 = arith.constant 0 : index
      %13 = vector.load %arg4[%c0_12, %c0_13] : memref<1x128xf32, #tpu.memory_space<vmem>>, vector<1x128xf32>
      %14 = vector.broadcast %13 : vector<1x128xf32> to vector<8x128xf32>
      %15 = arith.addf %12, %14 : vector<8x128xf32>
      %cst_14 = arith.constant 0.000000e+00 : f32
      %16 = vector.broadcast %cst_14 : f32 to vector<8x128xf32>
      %17 = arith.maximumf %15, %16 : vector<8x128xf32>
      %18 = arith.truncf %17 : vector<8x128xf32> to vector<8x128xbf16>
      %c0_15 = arith.constant 0 : index
      %c0_16 = arith.constant 0 : index
      %19 = vector.load %arg5[%c0_15, %c0_16] : memref<128x128xbf16, #tpu.memory_space<vmem>>, vector<128x128xbf16>
      %cst_17 = arith.constant dense<0.000000e+00> : vector<8x128xf32>
      %20 = tpu.matmul %18, %19, %cst_17 {dimension_numbers = #tpu.dot_dimension_numbers<[1], [0], [0], [1], [0, 0, 1, 1], [], []>} : vector<8x128xbf16>, vector<128x128xbf16>, vector<8x128xf32> -> vector<8x128xf32>
      %c0_18 = arith.constant 0 : index
      %c0_19 = arith.constant 0 : index
      %21 = vector.load %arg6[%c0_18, %c0_19] : memref<1x128xf32, #tpu.memory_space<vmem>>, vector<1x128xf32>
      %22 = vector.broadcast %21 : vector<1x128xf32> to vector<8x128xf32>
      %23 = arith.addf %20, %22 : vector<8x128xf32>
      %cst_20 = arith.constant 0.000000e+00 : f32
      %24 = vector.broadcast %cst_20 : f32 to vector<8x128xf32>
      %25 = arith.maximumf %23, %24 : vector<8x128xf32>
      %c0_21 = arith.constant 0 : index
      %c0_22 = arith.constant 0 : index
      %26 = vector.load %arg7[%c0_21, %c0_22] : memref<8x128xf32, #tpu.memory_space<vmem>>, vector<8x128xf32>
      tpu.vector_store %arg7[%c0_21, %c0_22], %25 {strides = array<i32>} : memref<8x128xf32, #tpu.memory_space<vmem>>, vector<8x128xf32>,
    } else {
    }
    return
  }
  func.func @transform_0(%arg0: i32, %arg1: i32) -> (i32, i32) {
    %c0_i32 = arith.constant 0 : i32
    return %arg0, %arg1 : i32, i32
  }
  func.func @transform_1(%arg0: i32, %arg1: i32) -> (i32, i32) {
    %c0_i32 = arith.constant 0 : i32
    %c0_i32_0 = arith.constant 0 : i32
    return %arg1, %c0_i32 : i32, i32
  }
  func.func @transform_2(%arg0: i32, %arg1: i32) -> (i32, i32) {
    %c0_i32 = arith.constant 0 : i32
    %c0_i32_0 = arith.constant 0 : i32
    %c0_i32_1 = arith.constant 0 : i32
    return %c0_i32, %c0_i32_0 : i32, i32
  }
  func.func @transform_3(%arg0: i32, %arg1: i32) -> (i32, i32) {
    %c0_i32 = arith.constant 0 : i32
    %c0_i32_0 = arith.constant 0 : i32
    %c0_i32_1 = arith.constant 0 : i32
    return %c0_i32, %c0_i32_0 : i32, i32
  }
  func.func @transform_4(%arg0: i32, %arg1: i32) -> (i32, i32) {
    %c0_i32 = arith.constant 0 : i32
    %c0_i32_0 = arith.constant 0 : i32
    %c0_i32_1 = arith.constant 0 : i32
    return %c0_i32, %c0_i32_0 : i32, i32
  }
  func.func @transform_5(%arg0: i32, %arg1: i32) -> (i32, i32) {
    %c0_i32 = arith.constant 0 : i32
    %c0_i32_0 = arith.constant 0 : i32
    return %arg0, %c0_i32 : i32, i32
  }
}

module attributes {stable_mosaic.version = 11 : i64} {
  func.func @_mlp_head_kernel(%arg0: i32, %arg1: i32, %arg2: memref<8x128xbf16, #tpu.memory_space<vmem>>, %arg3: memref<128x128xbf16, #tpu.memory_space<vmem>>, %arg4: memref<1x128xf32, #tpu.memory_space<vmem>>, %arg5: memref<128x128xbf16, #tpu.memory_space<vmem>>, %arg6: memref<1x128xf32, #tpu.memory_space<vmem>>, %arg7: memref<8x128xf32, #tpu.memory_space<vmem>>, %arg8: memref<8x128xf32, #tpu.memory_space<vmem>>) attributes {dimension_semantics = [#tpu.dimension_semantics<parallel>, #tpu.dimension_semantics<arbitrary>], iteration_bounds = array<i64: 1, 1>, scalar_prefetch = 0 : i64, scratch_operands = 1 : i64, tpu.core_type = #tpu.core_type<tc>, window_params = [{transform_indices = @transform_0, window_bounds = array<i64: 8, 128>}, {transform_indices = @transform_1, window_bounds = array<i64: 128, 128>}, {pipeline_mode = #tpu.pipeline_mode<synchronous>, transform_indices = @transform_2, window_bounds = array<i64: 1, 128>}, {pipeline_mode = #tpu.pipeline_mode<synchronous>, transform_indices = @transform_3, window_bounds = array<i64: 128, 128>}, {pipeline_mode = #tpu.pipeline_mode<synchronous>, transform_indices = @transform_4, window_bounds = array<i64: 1, 128>}, {transform_indices = @transform_5, window_bounds = array<i64: 8, 128>}]} {
    %c0_i32 = arith.constant 0 : i32
    %0 = arith.cmpi eq, %arg1, %c0_i32 : i32
    %1 = arith.extui %0 : i1 to i32
    %c0_i32_0 = arith.constant 0 : i32
    %2 = arith.cmpi ne, %1, %c0_i32_0 : i32
    scf.if %2 {
      %cst_10 = arith.constant 0.000000e+00 : f32
      %12 = vector.broadcast %cst_10 : f32 to vector<8x128xf32>
      %c0_11 = arith.constant 0 : index
      %c0_12 = arith.constant 0 : index
      %13 = vector.load %arg8[%c0_11, %c0_12] : memref<8x128xf32, #tpu.memory_space<vmem>>, vector<8x128xf32>
      tpu.vector_store %arg8[%c0_11, %c0_12], %12 {strides = array<i32>} : memref<8x128xf32, #tpu.memory_space<vmem>>, vector<8x128xf32>,
    } else {
    }
    %c0 = arith.constant 0 : index
    %c0_1 = arith.constant 0 : index
    %3 = vector.load %arg8[%c0, %c0_1] : memref<8x128xf32, #tpu.memory_space<vmem>>, vector<8x128xf32>
    %c0_2 = arith.constant 0 : index
    %c0_3 = arith.constant 0 : index
    %4 = vector.load %arg2[%c0_2, %c0_3] : memref<8x128xbf16, #tpu.memory_space<vmem>>, vector<8x128xbf16>
    %c0_4 = arith.constant 0 : index
    %c0_5 = arith.constant 0 : index
    %5 = vector.load %arg3[%c0_4, %c0_5] : memref<128x128xbf16, #tpu.memory_space<vmem>>, vector<128x128xbf16>
    %cst = arith.constant dense<0.000000e+00> : vector<8x128xf32>
    %6 = tpu.matmul %4, %5, %cst {dimension_numbers = #tpu.dot_dimension_numbers<[1], [0], [0], [1], [0, 0, 1, 1], [], []>} : vector<8x128xbf16>, vector<128x128xbf16>, vector<8x128xf32> -> vector<8x128xf32>
    %7 = arith.addf %3, %6 : vector<8x128xf32>
    %c0_6 = arith.constant 0 : index
    %c0_7 = arith.constant 0 : index
    %8 = vector.load %arg8[%c0_6, %c0_7] : memref<8x128xf32, #tpu.memory_space<vmem>>, vector<8x128xf32>
    tpu.vector_store %arg8[%c0_6, %c0_7], %7 {strides = array<i32>} : memref<8x128xf32, #tpu.memory_space<vmem>>, vector<8x128xf32>,
    %c0_i32_8 = arith.constant 0 : i32
    %9 = arith.cmpi eq, %arg1, %c0_i32_8 : i32
    %10 = arith.extui %9 : i1 to i32
    %c0_i32_9 = arith.constant 0 : i32
    %11 = arith.cmpi ne, %10, %c0_i32_9 : i32
    scf.if %11 {
      %c0_10 = arith.constant 0 : index
      %c0_11 = arith.constant 0 : index
      %12 = vector.load %arg8[%c0_10, %c0_11] : memref<8x128xf32, #tpu.memory_space<vmem>>, vector<8x128xf32>
      %c0_12 = arith.constant 0 : index
      %c0_13 = arith.constant 0 : index
      %13 = vector.load %arg4[%c0_12, %c0_13] : memref<1x128xf32, #tpu.memory_space<vmem>>, vector<1x128xf32>
      %14 = vector.broadcast %13 : vector<1x128xf32> to vector<8x128xf32>
      %15 = arith.addf %12, %14 : vector<8x128xf32>
      %cst_14 = arith.constant 0.000000e+00 : f32
      %16 = vector.broadcast %cst_14 : f32 to vector<8x128xf32>
      %17 = arith.maximumf %15, %16 : vector<8x128xf32>
      %18 = arith.truncf %17 : vector<8x128xf32> to vector<8x128xbf16>
      %c0_15 = arith.constant 0 : index
      %c0_16 = arith.constant 0 : index
      %19 = vector.load %arg5[%c0_15, %c0_16] : memref<128x128xbf16, #tpu.memory_space<vmem>>, vector<128x128xbf16>
      %cst_17 = arith.constant dense<0.000000e+00> : vector<8x128xf32>
      %20 = tpu.matmul %18, %19, %cst_17 {dimension_numbers = #tpu.dot_dimension_numbers<[1], [0], [0], [1], [0, 0, 1, 1], [], []>} : vector<8x128xbf16>, vector<128x128xbf16>, vector<8x128xf32> -> vector<8x128xf32>
      %c0_18 = arith.constant 0 : index
      %c0_19 = arith.constant 0 : index
      %21 = vector.load %arg6[%c0_18, %c0_19] : memref<1x128xf32, #tpu.memory_space<vmem>>, vector<1x128xf32>
      %22 = vector.broadcast %21 : vector<1x128xf32> to vector<8x128xf32>
      %23 = arith.addf %20, %22 : vector<8x128xf32>
      %cst_20 = arith.constant 0.000000e+00 : f32
      %24 = vector.broadcast %cst_20 : f32 to vector<8x128xf32>
      %25 = arith.maximumf %23, %24 : vector<8x128xf32>
      %c0_21 = arith.constant 0 : index
      %c0_22 = arith.constant 0 : index
      %26 = vector.load %arg7[%c0_21, %c0_22] : memref<8x128xf32, #tpu.memory_space<vmem>>, vector<8x128xf32>
      tpu.vector_store %arg7[%c0_21, %c0_22], %25 {strides = array<i32>} : memref<8x128xf32, #tpu.memory_space<vmem>>, vector<8x128xf32>,
    } else {
    }
    return
  }
  func.func @transform_0(%arg0: i32, %arg1: i32) -> (i32, i32) {
    %c0_i32 = arith.constant 0 : i32
    return %arg0, %arg1 : i32, i32
  }
  func.func @transform_1(%arg0: i32, %arg1: i32) -> (i32, i32) {
    %c0_i32 = arith.constant 0 : i32
    %c0_i32_0 = arith.constant 0 : i32
    return %arg1, %c0_i32 : i32, i32
  }
  func.func @transform_2(%arg0: i32, %arg1: i32) -> (i32, i32) {
    %c0_i32 = arith.constant 0 : i32
    %c0_i32_0 = arith.constant 0 : i32
    %c0_i32_1 = arith.constant 0 : i32
    return %c0_i32, %c0_i32_0 : i32, i32
  }
  func.func @transform_3(%arg0: i32, %arg1: i32) -> (i32, i32) {
    %c0_i32 = arith.constant 0 : i32
    %c0_i32_0 = arith.constant 0 : i32
    %c0_i32_1 = arith.constant 0 : i32
    return %c0_i32, %c0_i32_0 : i32, i32
  }
  func.func @transform_4(%arg0: i32, %arg1: i32) -> (i32, i32) {
    %c0_i32 = arith.constant 0 : i32
    %c0_i32_0 = arith.constant 0 : i32
    %c0_i32_1 = arith.constant 0 : i32
    return %c0_i32, %c0_i32_0 : i32, i32
  }
  func.func @transform_5(%arg0: i32, %arg1: i32) -> (i32, i32) {
    %c0_i32 = arith.constant 0 : i32
    %c0_i32_0 = arith.constant 0 : i32
    return %arg0, %c0_i32 : i32, i32
  }
}

</mosaic_0001>

<bundles_post_ra>
// kernel: tpu_custom_call.1
= control target key start
LH: loop header
LB: loop body
LE: loop exit
PB: predicated region body
PF: predicated region fallthrough
CT: control target
= control target key end

     0   :  { %10 = vsyncpa [#allocation4], 0  ;;  %s559_s0 = inlined_call_operand.hbm [shape: bf16[8,128], index: 0, kind: input, shape index: {}]   ;;  %s560_s1 = inlined_call_operand.hbm [shape: bf16[128,128], index: 1, kind: input, shape index: {}]   ;;  %s561_s2 = inlined_call_operand.vmem [shape: f32[1,128], index: 2, kind: input, shape index: {}]   ;;  %s562_s3 = inlined_call_operand.hbm [shape: bf16[128,128], index: 3, kind: input, shape index: {}]   ;;  %s563_s4 = inlined_call_operand.vmem [shape: f32[1,128], index: 4, kind: input, shape index: {}]   ;;  %s564_s5 = inlined_call_operand.hbm [shape: f32[8,128], index: 5, kind: output, shape index: {}]  }
   0x1   :  { %11 = vsyncpa [#allocation7], 0 }
   0x2   :  { %12 = vsyncpa [#allocation5], 0  ;;  %s503_s18 = smov [#allocation6]  }
   0x3   :  { %s28_s19 = sshll.u32 %s503_s18, 4  ;;  %s29_s19 = int_to_ptr.vmem [resolvable:$true] %s28_s19 }
   0x4   :  { %s425_s20 = scalar_lea.vmem %s29_s19, 1024  ;;  %p430_p1 = scmp.lt.s32.totalorder %s29_s19, %s29_s19 }
   0x5   :  { %p426_p0 = scmp.ne.s32.totalorder %s29_s19, %s425_s20  ;;  %p431_p2 = scmp.lt.s32.totalorder %s425_s20, %s425_s20 }
   0x7   :  { %p432_p3 = por %p431_p2, %p430_p1 }
   0x9   :  { %p433_p4 = pnand %p432_p3, %p426_p0 }
   0xb   :  { %436 = shalt.err (!%p433_p4)
}
   0xc   :  { %s504_s21 = smov 64   ;;  %s505_s22 = smov 4  }
   0xd   :  { %34 = dma.hbm_to_vmem [thread:$0]  %s560_s1, 1024, %s29_s19, [#allocation7], %s504_s21, %s504_s21, %s505_s22  }
   0xe   :  { %s506_s25 = smov [#allocation3]   ;;  %s507_s27 = smov [#allocation8]  }
   0xf   :  { %s19_s26 = sshll.u32 %s506_s25, 4  ;;  %s42_s28 = sshll.u32 %s507_s27, 4  ;;  %s20_s26 = int_to_ptr.vmem [resolvable:$true] %s19_s26  ;;  %s43_s28 = int_to_ptr.vmem [resolvable:$true] %s42_s28 }
  0x10   :  { %s445_s29 = scalar_lea.vmem %s20_s26, 64  ;;  %p450_p6 = scmp.lt.s32.totalorder %s20_s26, %s20_s26 }
  0x11   :  { %p446_p5 = scmp.ne.s32.totalorder %s20_s26, %s445_s29  ;;  %p451_p7 = scmp.lt.s32.totalorder %s445_s29, %s445_s29 }
  0x13   :  { %p452_p8 = por %p451_p7, %p450_p6 }
  0x15   :  { %p453_p9 = pnand %p452_p8, %p446_p5 }
  0x17   :  { %456 = shalt.err (!%p453_p9)
}
  0x18   :  { %22 = dma.hbm_to_vmem [thread:$0]  %s559_s0, 64, %s20_s26, [#allocation4]  }
  0x19   :  { %s465_s7 = scalar_lea.vmem %s43_s28, 1024  ;;  %p470_p11 = scmp.lt.s32.totalorder %s43_s28, %s43_s28 }
  0x1a   :  { %p466_p10 = scmp.ne.s32.totalorder %s43_s28, %s465_s7  ;;  %p471_p12 = scmp.lt.s32.totalorder %s465_s7, %s465_s7 }
  0x1c   :  { %p472_p13 = por %p471_p12, %p470_p11 }
  0x1e   :  { %p473_p0 = pnand %p472_p13, %p466_p10 }
  0x20   :  { %476 = shalt.err (!%p473_p0)
}
  0x21   :  { %48 = dma.hbm_to_vmem [thread:$0]  %s562_s3, 1024, %s43_s28, [#allocation7], %s504_s21, %s504_s21, %s505_s22  }
  0x22   :  { %497 = dma.done.wait [#allocation4], 64  }
  0x23   :  { %498 = vsyncadd [#allocation4], 4294967232 }
  0x24   :  { %499 = dma.done.wait [#allocation7], 2048  }
  0x25   :  { %500 = vsyncadd [#allocation7], 4294965248  ;;  %v508_v0 = vmov 0.0   ;;  %vm509_vm0 = vmmov 0   ;;  %v401_v1 = vld [vmem:[#allocation6 + $0x38] sm:$0xff]   ;;  %v402_v2 = vld [vmem:[#allocation6 + $0x30] sm:$0xff]  }
  0x26   :  { %353 = vmatprep.subr.bf16.mxu0 %v508_v0  ;;  %369 = vmatprep.mubr.msk.bf16.mxu0 %vm509_vm0, %v508_v0  ;;  %v403_v3 = vld [vmem:[#allocation6 + $0x28] sm:$0xff]   ;;  %v409_v4 = vld [vmem:[#allocation8 + $0x38] sm:$0xff]   ;;  %v404_v5 = vld [vmem:[#allocation6 + $0x20] sm:$0xff]   ;;  %s510_s11 = smov [#allocation9]  }
  0x27   :  { %373 = vmatprep.subr.bf16.mxu1 %v508_v0  ;;  %389 = vmatprep.mubr.msk.bf16.mxu1 %vm509_vm0, %v508_v0  ;;  %v410_v6 = vld [vmem:[#allocation8 + $0x30] sm:$0xff]   ;;  %v405_v7 = vld [vmem:[#allocation6 + $0x18] sm:$0xff]   ;;  %v411_v8 = vld [vmem:[#allocation8 + $0x28] sm:$0xff]   ;;  %s307_s12 = sshll.u32 %s510_s11, 4  ;;  %s308_s12 = int_to_ptr.vmem [resolvable:$true] %s307_s12 }
  0x28   :  { %354 = vmatpush3.bf16.msra.mxu0 %v401_v1  ;;  %374 = vmatpush3.bf16.msra.mxu1 %v409_v4  ;;  %v406_v9 = vld [vmem:[#allocation6 + $0x10] sm:$0xff]   ;;  %v412_v10 = vld [vmem:[#allocation8 + $0x20] sm:$0xff]   ;;  %v407_v11 = vld [vmem:[#allocation6 + $0x8] sm:$0xff]   ;;  %p482_p2 = scmp.lt.s32.totalorder %s308_s12, %s308_s12 }
  0x29   :  { %355 = vmatprep.subr.bf16.mxu0 %v508_v0  ;;  %375 = vmatprep.subr.bf16.mxu1 %v508_v0  ;;  %v413_v12 = vld [vmem:[#allocation8 + $0x18] sm:$0xff]   ;;  %v408_v13 = vld [vmem:[#allocation6] sm:$0xff]   ;;  %v414_v14 = vld [vmem:[#allocation8 + $0x10] sm:$0xff]  }
  0x2a   :  { %v67_v15 = vld [vmem:[#allocation3] sm:$0xf]  ;;  %v415_v16 = vld [vmem:[#allocation8 + $0x8] sm:$0xff]   ;;  %v416_v17 = vld [vmem:[#allocation8] sm:$0xff]  }
  0x2b   :  { %v325_v18 = vld [vmem:[%s561_s2] ss:$0 sm:$0xff]  ;;  %s477_s2 = scalar_lea.vmem %s308_s12, 128 }
  0x2c   :  { %356 = vmatpush3.bf16.msra.mxu0 %v402_v2  ;;  %376 = vmatpush3.bf16.msra.mxu1 %v410_v6  ;;  %v326_v26 = vld [vmem:[%s563_s4] ss:$0 sm:$0xff]  ;;  %p478_p1 = scmp.ne.s32.totalorder %s308_s12, %s477_s2  ;;  %p483_p3 = scmp.lt.s32.totalorder %s477_s2, %s477_s2 }
  0x2d   :  { %357 = vmatprep.subr.bf16.mxu0 %v508_v0  ;;  %377 = vmatprep.subr.bf16.mxu1 %v508_v0 }
  0x2e   :  { %p484_p4 = por %p483_p3, %p482_p2 }
  0x30   :  { %358 = vmatpush3.bf16.msra.mxu0 %v403_v3  ;;  %378 = vmatpush3.bf16.msra.mxu1 %v411_v8  ;;  %p485_p5 = pnand %p484_p4, %p478_p1 }
  0x31   :  { %359 = vmatprep.subr.bf16.mxu0 %v508_v0  ;;  %379 = vmatprep.subr.bf16.mxu1 %v508_v0 }
  0x34   :  { %360 = vmatpush3.bf16.msra.mxu0 %v404_v5  ;;  %380 = vmatpush3.bf16.msra.mxu1 %v412_v10 }
  0x35   :  { %361 = vmatprep.subr.bf16.mxu0 %v508_v0  ;;  %381 = vmatprep.subr.bf16.mxu1 %v508_v0 }
  0x38   :  { %362 = vmatpush3.bf16.msra.mxu0 %v405_v7  ;;  %382 = vmatpush3.bf16.msra.mxu1 %v413_v12 }
  0x39   :  { %363 = vmatprep.subr.bf16.mxu0 %v508_v0  ;;  %383 = vmatprep.subr.bf16.mxu1 %v508_v0 }
  0x3c   :  { %364 = vmatpush3.bf16.msra.mxu0 %v406_v9  ;;  %384 = vmatpush3.bf16.msra.mxu1 %v414_v14 }
  0x3d   :  { %365 = vmatprep.subr.bf16.mxu0 %v508_v0  ;;  %385 = vmatprep.subr.bf16.mxu1 %v508_v0 }
  0x40   :  { %366 = vmatpush3.bf16.msra.mxu0 %v407_v11  ;;  %386 = vmatpush3.bf16.msra.mxu1 %v415_v16 }
  0x41   :  { %367 = vmatprep.subr.bf16.mxu0 %v508_v0  ;;  %387 = vmatprep.subr.bf16.mxu1 %v508_v0 }
  0x44   :  { %368 = vmatpush3.bf16.msra.mxu0 %v408_v13  ;;  %388 = vmatpush3.bf16.msra.mxu1 %v416_v17 }
  0x47   :  { %370 = vmatmul.mubr.bf16.vlgmr.msra.gmra.mxu0 %v67_v15 }
 0x107   :  { %v166_v19 = vpop.f32.mrf.mxu0 }
 0x108   :  { %v185_v20 = vadd.f32 %v325_v18, %v166_v19 }
 0x109   :  { %v371_v21 = vpop.f32.mrf.mxu0 }
 0x10a   :  { %v186_v22 = vmax.f32 %v185_v20, 0.0 }
 0x10b   :  { %v169_v23 = vpop.f32.mrf.mxu0 }
 0x10c   :  { %v187_v24 = vpack.c.bf16 %v186_v22, %v186_v22 }
 0x10d   :  { %v372_v25 = vpop.f32.mrf.mxu0 }
 0x10e   :  { %390 = vmatmul.mubr.bf16.vlgmr.msra.gmra.mxu1 %v187_v24 }
 0x1ce   :  { %v293_v27 = vpop.f32.mrf.mxu1 }
 0x1cf   :  { %v294_v28 = vadd.f32 %v326_v26, %v293_v27 }
 0x1d0   :  { %v391_v29 = vpop.f32.mrf.mxu1 }
 0x1d1   :  { %v299_v30 = vmax.f32 %v294_v28, 0.0 }
 0x1d2   :  { %v296_v31 = vpop.f32.mrf.mxu1 }
 0x1d3   :  { %300 = vst [vmem:[#allocation9] sm:$0xff] %v299_v30 }
 0x1d4   :  { %v392_v32 = vpop.f32.mrf.mxu1 }
 0x1d5   :  { %488 = shalt.err (!%p485_p5)
}
 0x1d6   :  { %310 = dma.vmem_to_hbm [thread:$0]  %s308_s12, 128, %s564_s5, [#allocation5]  }
 0x1d7   :  { %501 = dma.done.wait [#allocation5], 128  }
 0x1d8   :  { %502 = vsyncadd [#allocation5], 4294967168 }
 0x1d9   :  { %314 = vsyncpa [#allocation4], 1 }
 0x1da   :  { %315 = vsyncpa [#allocation7], 1 }
 0x1db   :  { %316 = vsyncpa [#allocation5], 1 }

// kernel: tpu_custom_call.1
= control target key start
LH: loop header
LB: loop body
LE: loop exit
PB: predicated region body
PF: predicated region fallthrough
CT: control target
= control target key end

     0   :  { %10 = vsyncpa [#allocation4], 0  ;;  %s559_s0 = inlined_call_operand.hbm [shape: bf16[8,128], index: 0, kind: input, shape index: {}]   ;;  %s560_s1 = inlined_call_operand.hbm [shape: bf16[128,128], index: 1, kind: input, shape index: {}]   ;;  %s561_s2 = inlined_call_operand.vmem [shape: f32[1,128], index: 2, kind: input, shape index: {}]   ;;  %s562_s3 = inlined_call_operand.hbm [shape: bf16[128,128], index: 3, kind: input, shape index: {}]   ;;  %s563_s4 = inlined_call_operand.vmem [shape: f32[1,128], index: 4, kind: input, shape index: {}]   ;;  %s564_s5 = inlined_call_operand.hbm [shape: f32[8,128], index: 5, kind: output, shape index: {}]  }
   0x1   :  { %11 = vsyncpa [#allocation7], 0 }
   0x2   :  { %12 = vsyncpa [#allocation5], 0  ;;  %s503_s18 = smov [#allocation6]  }
   0x3   :  { %s28_s19 = sshll.u32 %s503_s18, 4  ;;  %s29_s19 = int_to_ptr.vmem [resolvable:$true] %s28_s19 }
   0x4   :  { %s425_s20 = scalar_lea.vmem %s29_s19, 1024  ;;  %p430_p1 = scmp.lt.s32.totalorder %s29_s19, %s29_s19 }
   0x5   :  { %p426_p0 = scmp.ne.s32.totalorder %s29_s19, %s425_s20  ;;  %p431_p2 = scmp.lt.s32.totalorder %s425_s20, %s425_s20 }
   0x7   :  { %p432_p3 = por %p431_p2, %p430_p1 }
   0x9   :  { %p433_p4 = pnand %p432_p3, %p426_p0 }
   0xb   :  { %436 = shalt.err (!%p433_p4)
}
   0xc   :  { %s504_s21 = smov 64   ;;  %s505_s22 = smov 4  }
   0xd   :  { %34 = dma.hbm_to_vmem [thread:$0]  %s560_s1, 1024, %s29_s19, [#allocation7], %s504_s21, %s504_s21, %s505_s22  }
   0xe   :  { %s506_s25 = smov [#allocation3]   ;;  %s507_s27 = smov [#allocation8]  }
   0xf   :  { %s19_s26 = sshll.u32 %s506_s25, 4  ;;  %s42_s28 = sshll.u32 %s507_s27, 4  ;;  %s20_s26 = int_to_ptr.vmem [resolvable:$true] %s19_s26  ;;  %s43_s28 = int_to_ptr.vmem [resolvable:$true] %s42_s28 }
  0x10   :  { %s445_s29 = scalar_lea.vmem %s20_s26, 64  ;;  %p450_p6 = scmp.lt.s32.totalorder %s20_s26, %s20_s26 }
  0x11   :  { %p446_p5 = scmp.ne.s32.totalorder %s20_s26, %s445_s29  ;;  %p451_p7 = scmp.lt.s32.totalorder %s445_s29, %s445_s29 }
  0x13   :  { %p452_p8 = por %p451_p7, %p450_p6 }
  0x15   :  { %p453_p9 = pnand %p452_p8, %p446_p5 }
  0x17   :  { %456 = shalt.err (!%p453_p9)
}
  0x18   :  { %22 = dma.hbm_to_vmem [thread:$0]  %s559_s0, 64, %s20_s26, [#allocation4]  }
  0x19   :  { %s465_s7 = scalar_lea.vmem %s43_s28, 1024  ;;  %p470_p11 = scmp.lt.s32.totalorder %s43_s28, %s43_s28 }
  0x1a   :  { %p466_p10 = scmp.ne.s32.totalorder %s43_s28, %s465_s7  ;;  %p471_p12 = scmp.lt.s32.totalorder %s465_s7, %s465_s7 }
  0x1c   :  { %p472_p13 = por %p471_p12, %p470_p11 }
  0x1e   :  { %p473_p0 = pnand %p472_p13, %p466_p10 }
  0x20   :  { %476 = shalt.err (!%p473_p0)
}
  0x21   :  { %48 = dma.hbm_to_vmem [thread:$0]  %s562_s3, 1024, %s43_s28, [#allocation7], %s504_s21, %s504_s21, %s505_s22  }
  0x22   :  { %497 = dma.done.wait [#allocation4], 64  }
  0x23   :  { %498 = vsyncadd [#allocation4], 4294967232 }
  0x24   :  { %499 = dma.done.wait [#allocation7], 2048  }
  0x25   :  { %500 = vsyncadd [#allocation7], 4294965248  ;;  %v508_v0 = vmov 0.0   ;;  %vm509_vm0 = vmmov 0   ;;  %v401_v1 = vld [vmem:[#allocation6 + $0x38] sm:$0xff]   ;;  %v402_v2 = vld [vmem:[#allocation6 + $0x30] sm:$0xff]  }
  0x26   :  { %353 = vmatprep.subr.bf16.mxu0 %v508_v0  ;;  %369 = vmatprep.mubr.msk.bf16.mxu0 %vm509_vm0, %v508_v0  ;;  %v403_v3 = vld [vmem:[#allocation6 + $0x28] sm:$0xff]   ;;  %v409_v4 = vld [vmem:[#allocation8 + $0x38] sm:$0xff]   ;;  %v404_v5 = vld [vmem:[#allocation6 + $0x20] sm:$0xff]   ;;  %s510_s11 = smov [#allocation9]  }
  0x27   :  { %373 = vmatprep.subr.bf16.mxu1 %v508_v0  ;;  %389 = vmatprep.mubr.msk.bf16.mxu1 %vm509_vm0, %v508_v0  ;;  %v410_v6 = vld [vmem:[#allocation8 + $0x30] sm:$0xff]   ;;  %v405_v7 = vld [vmem:[#allocation6 + $0x18] sm:$0xff]   ;;  %v411_v8 = vld [vmem:[#allocation8 + $0x28] sm:$0xff]   ;;  %s307_s12 = sshll.u32 %s510_s11, 4  ;;  %s308_s12 = int_to_ptr.vmem [resolvable:$true] %s307_s12 }
  0x28   :  { %354 = vmatpush3.bf16.msra.mxu0 %v401_v1  ;;  %374 = vmatpush3.bf16.msra.mxu1 %v409_v4  ;;  %v406_v9 = vld [vmem:[#allocation6 + $0x10] sm:$0xff]   ;;  %v412_v10 = vld [vmem:[#allocation8 + $0x20] sm:$0xff]   ;;  %v407_v11 = vld [vmem:[#allocation6 + $0x8] sm:$0xff]   ;;  %p482_p2 = scmp.lt.s32.totalorder %s308_s12, %s308_s12 }
  0x29   :  { %355 = vmatprep.subr.bf16.mxu0 %v508_v0  ;;  %375 = vmatprep.subr.bf16.mxu1 %v508_v0  ;;  %v413_v12 = vld [vmem:[#allocation8 + $0x18] sm:$0xff]   ;;  %v408_v13 = vld [vmem:[#allocation6] sm:$0xff]   ;;  %v414_v14 = vld [vmem:[#allocation8 + $0x10] sm:$0xff]  }
  0x2a   :  { %v67_v15 = vld [vmem:[#allocation3] sm:$0xf]  ;;  %v415_v16 = vld [vmem:[#allocation8 + $0x8] sm:$0xff]   ;;  %v416_v17 = vld [vmem:[#allocation8] sm:$0xff]  }
  0x2b   :  { %v325_v18 = vld [vmem:[%s561_s2] ss:$0 sm:$0xff]  ;;  %s477_s2 = scalar_lea.vmem %s308_s12, 128 }
  0x2c   :  { %356 = vmatpush3.bf16.msra.mxu0 %v402_v2  ;;  %376 = vmatpush3.bf16.msra.mxu1 %v410_v6  ;;  %v326_v26 = vld [vmem:[%s563_s4] ss:$0 sm:$0xff]  ;;  %p478_p1 = scmp.ne.s32.totalorder %s308_s12, %s477_s2  ;;  %p483_p3 = scmp.lt.s32.totalorder %s477_s2, %s477_s2 }
  0x2d   :  { %357 = vmatprep.subr.bf16.mxu0 %v508_v0  ;;  %377 = vmatprep.subr.bf16.mxu1 %v508_v0 }
  0x2e   :  { %p484_p4 = por %p483_p3, %p482_p2 }
  0x30   :  { %358 = vmatpush3.bf16.msra.mxu0 %v403_v3  ;;  %378 = vmatpush3.bf16.msra.mxu1 %v411_v8  ;;  %p485_p5 = pnand %p484_p4, %p478_p1 }
  0x31   :  { %359 = vmatprep.subr.bf16.mxu0 %v508_v0  ;;  %379 = vmatprep.subr.bf16.mxu1 %v508_v0 }
  0x34   :  { %360 = vmatpush3.bf16.msra.mxu0 %v404_v5  ;;  %380 = vmatpush3.bf16.msra.mxu1 %v412_v10 }
  0x35   :  { %361 = vmatprep.subr.bf16.mxu0 %v508_v0  ;;  %381 = vmatprep.subr.bf16.mxu1 %v508_v0 }
  0x38   :  { %362 = vmatpush3.bf16.msra.mxu0 %v405_v7  ;;  %382 = vmatpush3.bf16.msra.mxu1 %v413_v12 }
  0x39   :  { %363 = vmatprep.subr.bf16.mxu0 %v508_v0  ;;  %383 = vmatprep.subr.bf16.mxu1 %v508_v0 }
  0x3c   :  { %364 = vmatpush3.bf16.msra.mxu0 %v406_v9  ;;  %384 = vmatpush3.bf16.msra.mxu1 %v414_v14 }
  0x3d   :  { %365 = vmatprep.subr.bf16.mxu0 %v508_v0  ;;  %385 = vmatprep.subr.bf16.mxu1 %v508_v0 }
  0x40   :  { %366 = vmatpush3.bf16.msra.mxu0 %v407_v11  ;;  %386 = vmatpush3.bf16.msra.mxu1 %v415_v16 }
  0x41   :  { %367 = vmatprep.subr.bf16.mxu0 %v508_v0  ;;  %387 = vmatprep.subr.bf16.mxu1 %v508_v0 }
  0x44   :  { %368 = vmatpush3.bf16.msra.mxu0 %v408_v13  ;;  %388 = vmatpush3.bf16.msra.mxu1 %v416_v17 }
  0x47   :  { %370 = vmatmul.mubr.bf16.vlgmr.msra.gmra.mxu0 %v67_v15 }
 0x107   :  { %v166_v19 = vpop.f32.mrf.mxu0 }
 0x108   :  { %v185_v20 = vadd.f32 %v325_v18, %v166_v19 }
 0x109   :  { %v371_v21 = vpop.f32.mrf.mxu0 }
 0x10a   :  { %v186_v22 = vmax.f32 %v185_v20, 0.0 }
 0x10b   :  { %v169_v23 = vpop.f32.mrf.mxu0 }
 0x10c   :  { %v187_v24 = vpack.c.bf16 %v186_v22, %v186_v22 }
 0x10d   :  { %v372_v25 = vpop.f32.mrf.mxu0 }
 0x10e   :  { %390 = vmatmul.mubr.bf16.vlgmr.msra.gmra.mxu1 %v187_v24 }
 0x1ce   :  { %v293_v27 = vpop.f32.mrf.mxu1 }
 0x1cf   :  { %v294_v28 = vadd.f32 %v326_v26, %v293_v27 }
 0x1d0   :  { %v391_v29 = vpop.f32.mrf.mxu1 }
 0x1d1   :  { %v299_v30 = vmax.f32 %v294_v28, 0.0 }
 0x1d2   :  { %v296_v31 = vpop.f32.mrf.mxu1 }
 0x1d3   :  { %300 = vst [vmem:[#allocation9] sm:$0xff] %v299_v30 }
 0x1d4   :  { %v392_v32 = vpop.f32.mrf.mxu1 }
 0x1d5   :  { %488 = shalt.err (!%p485_p5)
}
 0x1d6   :  { %310 = dma.vmem_to_hbm [thread:$0]  %s308_s12, 128, %s564_s5, [#allocation5]  }
 0x1d7   :  { %501 = dma.done.wait [#allocation5], 128  }
 0x1d8   :  { %502 = vsyncadd [#allocation5], 4294967168 }
 0x1d9   :  { %314 = vsyncpa [#allocation4], 1 }
 0x1da   :  { %315 = vsyncpa [#allocation7], 1 }
 0x1db   :  { %316 = vsyncpa [#allocation5], 1 }

</bundles_post_ra>
